<compile_context>
chip_gen: v5e
topology: v5e:2x2
jax: 0.10.0
libtpu: 0.0.40
codegen_flags: <defaults>
</compile_context>

<pallas_src>
import jax
import jax.numpy as jnp
from jax.experimental import pallas as pl
from jax.experimental.pallas import tpu as pltpu


def snn_kernel(x_ref, rows_ref, w_h_ref, sc_ref, out_ref):
    T, B, _ = x_ref.shape
    H = w_h_ref.shape[0]

    # ---- unpack the packed [8, H] per-feature parameter block ----
    w_in = rows_ref[0:1, :]      # fc_in weight (Linear(1,H) flattened)      [1,H]
    b_in = rows_ref[1:2, :]      # fc_in bias                                [1,H]

    # Rows used inside the time loop: broadcast to [B,H] ONCE (hoisted).
    def row_b(i):
        return jnp.broadcast_to(rows_ref[i:i + 1, :], (B, H))

    beta_in = row_b(2)           # lif_in decay (pre-clamped to [0,1])
    thr_in  = row_b(3)           # lif_in threshold
    b_h     = row_b(4)           # fc_hidden bias
    beta_h  = row_b(5)           # lif_hidden decay
    thr_h   = row_b(6)           # lif_hidden threshold
    w_out   = row_b(7)           # fc_out weight stored as a row

    b_out    = sc_ref[0]         # fc_out bias   (scalar, SMEM)
    beta_out = sc_ref[1]         # li_out decay  (scalar, SMEM)

    w_h = w_h_ref[...]           # [H, H] bf16 (act @ w layout)
    x = x_ref[...]               # [T, B, 1] f32

    # fc_in has no dependence on membrane state: hoist it out of the serial
    # recurrence and compute every timestep's input current in one VPU op.
    cur_all = x * w_in[None] + b_in[None]          # [T, B, H]

    # init_leaky(): membrane potentials start at zero. Carried as values.
    mem1 = jnp.zeros((B, H), jnp.float32)
    mem2 = jnp.zeros((B, H), jnp.float32)
    mem3 = jnp.zeros((B, 1), jnp.float32)

    # Fully unrolled static time loop (T is small and static); the output HBM
    # writeback happens once when the kernel finishes.
    for t in range(T):
        cur_in = cur_all[t]                                        # [B, H]

        # --- lif_in (Leaky, reset='subtract'): heaviside(mem - thr) * thr
        #     folded into a single select ---
        reset1 = jnp.where(mem1 - thr_in > 0, thr_in, 0.0)
        mem1 = beta_in * mem1 + cur_in - reset1
        spk1 = (mem1 - thr_in > 0).astype(jnp.bfloat16)            # MXU operand

        # --- fc_hidden on the MXU (bf16 operands, f32 accumulate) ---
        cur_h = jnp.dot(spk1, w_h, preferred_element_type=jnp.float32) + b_h

        # --- lif_hidden (Leaky, reset='subtract') ---
        reset2 = jnp.where(mem2 - thr_h > 0, thr_h, 0.0)
        mem2 = beta_h * mem2 + cur_h - reset2
        spk2 = (mem2 - thr_h > 0).astype(jnp.float32)

        # --- fc_out as VPU multiply + XLU lane reduction (1 output feature) ---
        cur_out = jnp.sum(spk2 * w_out, axis=-1, keepdims=True) + b_out   # [B, 1]

        # --- li_out (Leaky, reset='none'): pure leaky integrator ---
        mem3 = beta_out * mem3 + cur_out
        out_ref[t] = mem3        # cheap VMEM store; single HBM DMA at kernel end


def snn_forward(x, p):
    T, B, _ = x.shape
    H = p["w_h"].shape[0]

    # Pack the eight [1, H] row parameters into one (8, H) block = one vreg tile.
    rows = jnp.concatenate(
        [p["w_in"], p["b_in"], p["beta_in"], p["thr_in"],
         p["b_h"], p["beta_h"], p["thr_h"], p["w_out"]],
        axis=0).astype(jnp.float32)                               # [8, H]

    # The two genuine scalars go to SMEM.
    scalars = jnp.concatenate(
        [p["b_out"].reshape(-1), p["beta_out"].reshape(-1)]).astype(jnp.float32)  # [2]

    # bf16 weights for the MXU. Exact for the 1/256-quantized synthetic init;
    # for arbitrary weights this is a (tiny) numerics change — keep f32 if exactness
    # vs. the PyTorch module is required.
    w_h_bf16 = p["w_h"].astype(jnp.bfloat16)                      # [H, H]

    return pl.pallas_call(
        snn_kernel,
        out_shape=jax.ShapeDtypeStruct((T, B, 1), jnp.float32),
        in_specs=[
            pl.BlockSpec(memory_space=pltpu.MemorySpace.VMEM),    # x       [T,B,1]
            pl.BlockSpec(memory_space=pltpu.MemorySpace.VMEM),    # rows    [8,H]
            pl.BlockSpec(memory_space=pltpu.MemorySpace.VMEM),    # w_h     [H,H] bf16
            pl.BlockSpec(memory_space=pltpu.MemorySpace.SMEM),    # scalars [2]
        ],
        out_specs=pl.BlockSpec(memory_space=pltpu.MemorySpace.VMEM),
    )(x, rows, w_h_bf16, scalars)


def snn_reference(x, p):
    """Pure-JAX reference of the PyTorch forward (for validation)."""
    T, B, _ = x.shape
    H = p["w_h"].shape[0]
    mem1 = jnp.zeros((B, H), jnp.float32)
    mem2 = jnp.zeros((B, H), jnp.float32)
    mem3 = jnp.zeros((B, 1), jnp.float32)
    outs = []
    for t in range(T):
        cur_in = x[t] * p["w_in"] + p["b_in"]
        reset1 = (mem1 - p["thr_in"] > 0).astype(jnp.float32)
        mem1 = p["beta_in"] * mem1 + cur_in - reset1 * p["thr_in"]
        spk1 = (mem1 - p["thr_in"] > 0).astype(jnp.float32)
        cur_h = spk1 @ p["w_h"] + p["b_h"]
        reset2 = (mem2 - p["thr_h"] > 0).astype(jnp.float32)
        mem2 = p["beta_h"] * mem2 + cur_h - reset2 * p["thr_h"]
        spk2 = (mem2 - p["thr_h"] > 0).astype(jnp.float32)
        cur_out = spk2 @ p["w_out"].T + p["b_out"]
        mem3 = p["beta_out"] * mem3 + cur_out
        outs.append(mem3)
    return jnp.stack(outs)


def init_params(key, hidden):
    """Deterministic synthetic init mirroring the module's shapes.

    Linear weights/biases ~ U(-1/sqrt(fan_in), 1/sqrt(fan_in)) (torch default),
    quantized to multiples of 1/256 so the 0/1-spike matmuls (and the bf16 cast
    of w_h) are bit-exact, keeping kernel-vs-reference comparison deterministic.
    beta/thr ~ U[0,1) as in the module.
    """
    ks = jax.random.split(key, 12)
    q = lambda a: jnp.round(a * 256.0) / 256.0
    u = lambda k, shape, b: q(jax.random.uniform(k, shape, jnp.float32, -b, b))
    H = hidden
    inv_sqrt_h = 1.0 / float(H) ** 0.5
    p = {
        # fc_in: Linear(1, H)   -> stored as row [1, H]
        "w_in":  u(ks[0], (1, H), 1.0),
        "b_in":  u(ks[1], (1, H), 1.0),
        # fc_hidden: Linear(H, H) -> stored transposed [H, H] (act @ w)
        "w_h":   u(ks[2], (H, H), inv_sqrt_h),
        "b_h":   u(ks[3], (1, H), inv_sqrt_h),
        # fc_out: Linear(H, 1) -> stored as row [1, H]
        "w_out": u(ks[4], (1, H), inv_sqrt_h),
        "b_out": u(ks[5], (1, 1), inv_sqrt_h),
        # Leaky params: beta = rand(H) (clamped to [0,1] as snntorch does), thr = rand(H)
        "beta_in": jnp.clip(jax.random.uniform(ks[6], (1, H), jnp.float32), 0.0, 1.0),
        "thr_in":  jax.random.uniform(ks[7], (1, H), jnp.float32),
        "beta_h":  jnp.clip(jax.random.uniform(ks[8], (1, H), jnp.float32), 0.0, 1.0),
        "thr_h":   jax.random.uniform(ks[9], (1, H), jnp.float32),
        "beta_out": jnp.clip(jax.random.uniform(ks[10], (1, 1), jnp.float32), 0.0, 1.0),
        # li_out threshold is fixed 1.0 but never used (reset='none', spike discarded)
    }
    return p


if __name__ == "__main__":
    TIMESTEPS, BATCH, HIDDEN = 8, 8, 128   # hidden=128 as in the module; small T/B
    key = jax.random.PRNGKey(0)
    kx, kp = jax.random.split(key)
    x = jax.random.normal(kx, (TIMESTEPS, BATCH, 1), jnp.float32)
    params = init_params(kp, HIDDEN)

    out = snn_forward(x, params)
    out = jax.block_until_ready(out)

    ref = snn_reference(x, params)
    assert out.shape == (TIMESTEPS, BATCH, 1), out.shape
    assert bool(jnp.all(jnp.isfinite(out)))
    assert bool(jnp.allclose(out, ref, atol=1e-5, rtol=1e-5)), "kernel != reference"

    print("KERNEL_OK")
</pallas_src>

<mosaic_0001>
module attributes {stable_mosaic.version = 11 : i64} {
  func.func @snn_kernel(%arg0: memref<8x8x1xf32, #tpu.memory_space<vmem>>, %arg1: memref<8x128xf32, #tpu.memory_space<vmem>>, %arg2: memref<128x128xbf16, #tpu.memory_space<vmem>>, %arg3: memref<2xf32, #tpu.memory_space<smem>>, %arg4: memref<8x8x1xf32, #tpu.memory_space<vmem>>) attributes {dimension_semantics = [], scalar_prefetch = 0 : i64, scratch_operands = 0 : i64, tpu.core_type = #tpu.core_type<tc>} {
    %c0 = arith.constant 0 : index
    %c0_0 = arith.constant 0 : index
    %0 = vector.load %arg1[%c0, %c0_0] : memref<8x128xf32, #tpu.memory_space<vmem>>, vector<1x128xf32>
    %c1 = arith.constant 1 : index
    %c0_1 = arith.constant 0 : index
    %1 = vector.load %arg1[%c1, %c0_1] : memref<8x128xf32, #tpu.memory_space<vmem>>, vector<1x128xf32>
    %c2 = arith.constant 2 : index
    %c0_2 = arith.constant 0 : index
    %2 = vector.load %arg1[%c2, %c0_2] : memref<8x128xf32, #tpu.memory_space<vmem>>, vector<1x128xf32>
    %3 = vector.shape_cast %2 : vector<1x128xf32> to vector<1x128xf32>
    %4 = vector.broadcast %3 : vector<1x128xf32> to vector<8x128xf32>
    %c3 = arith.constant 3 : index
    %c0_3 = arith.constant 0 : index
    %5 = vector.load %arg1[%c3, %c0_3] : memref<8x128xf32, #tpu.memory_space<vmem>>, vector<1x128xf32>
    %6 = vector.shape_cast %5 : vector<1x128xf32> to vector<1x128xf32>
    %7 = vector.broadcast %6 : vector<1x128xf32> to vector<8x128xf32>
    %c4 = arith.constant 4 : index
    %c0_4 = arith.constant 0 : index
    %8 = vector.load %arg1[%c4, %c0_4] : memref<8x128xf32, #tpu.memory_space<vmem>>, vector<1x128xf32>
    %9 = vector.shape_cast %8 : vector<1x128xf32> to vector<1x128xf32>
    %10 = vector.broadcast %9 : vector<1x128xf32> to vector<8x128xf32>
    %c5 = arith.constant 5 : index
    %c0_5 = arith.constant 0 : index
    %11 = vector.load %arg1[%c5, %c0_5] : memref<8x128xf32, #tpu.memory_space<vmem>>, vector<1x128xf32>
    %12 = vector.shape_cast %11 : vector<1x128xf32> to vector<1x128xf32>
    %13 = vector.broadcast %12 : vector<1x128xf32> to vector<8x128xf32>
    %c6 = arith.constant 6 : index
    %c0_6 = arith.constant 0 : index
    %14 = vector.load %arg1[%c6, %c0_6] : memref<8x128xf32, #tpu.memory_space<vmem>>, vector<1x128xf32>
    %15 = vector.shape_cast %14 : vector<1x128xf32> to vector<1x128xf32>
    %16 = vector.broadcast %15 : vector<1x128xf32> to vector<8x128xf32>
    %c7 = arith.constant 7 : index
    %c0_7 = arith.constant 0 : index
    %17 = vector.load %arg1[%c7, %c0_7] : memref<8x128xf32, #tpu.memory_space<vmem>>, vector<1x128xf32>
    %18 = vector.shape_cast %17 : vector<1x128xf32> to vector<1x128xf32>
    %19 = vector.broadcast %18 : vector<1x128xf32> to vector<8x128xf32>
    %c0_8 = arith.constant 0 : index
    %20 = memref.load %arg3[%c0_8] : memref<2xf32, #tpu.memory_space<smem>>
    %c1_9 = arith.constant 1 : index
    %21 = memref.load %arg3[%c1_9] : memref<2xf32, #tpu.memory_space<smem>>
    %c0_10 = arith.constant 0 : index
    %c0_11 = arith.constant 0 : index
    %22 = vector.load %arg2[%c0_10, %c0_11] : memref<128x128xbf16, #tpu.memory_space<vmem>>, vector<128x128xbf16>
    %c0_12 = arith.constant 0 : index
    %c0_13 = arith.constant 0 : index
    %c0_14 = arith.constant 0 : index
    %23 = vector.load %arg0[%c0_12, %c0_13, %c0_14] : memref<8x8x1xf32, #tpu.memory_space<vmem>>, vector<8x8x1xf32>
    %24 = vector.shape_cast %0 : vector<1x128xf32> to vector<1x1x128xf32>
    %25 = vector.broadcast %23 : vector<8x8x1xf32> to vector<8x8x128xf32>
    %26 = vector.broadcast %24 : vector<1x1x128xf32> to vector<8x8x128xf32>
    %27 = arith.mulf %25, %26 : vector<8x8x128xf32>
    %28 = vector.shape_cast %1 : vector<1x128xf32> to vector<1x1x128xf32>
    %29 = vector.broadcast %28 : vector<1x1x128xf32> to vector<8x8x128xf32>
    %30 = arith.addf %27, %29 : vector<8x8x128xf32>
    %cst = arith.constant 0.000000e+00 : f32
    %31 = vector.broadcast %cst : f32 to vector<8x128xf32>
    %cst_15 = arith.constant 0.000000e+00 : f32
    %32 = vector.broadcast %cst_15 : f32 to vector<8x128xf32>
    %cst_16 = arith.constant 0.000000e+00 : f32
    %33 = vector.broadcast %cst_16 : f32 to vector<8x1xf32>
    %34 = vector.extract_strided_slice %30 {offsets = [0, 0, 0], sizes = [1, 8, 128], strides = [1, 1, 1]} : vector<8x8x128xf32> to vector<1x8x128xf32>
    %35 = vector.shape_cast %34 : vector<1x8x128xf32> to vector<8x128xf32>
    %36 = arith.subf %31, %7 : vector<8x128xf32>
    %cst_17 = arith.constant 0.000000e+00 : f32
    %37 = vector.broadcast %cst_17 : f32 to vector<8x128xf32>
    %38 = arith.cmpf ogt, %36, %37 : vector<8x128xf32>
    %cst_18 = arith.constant 0.000000e+00 : f32
    %39 = vector.broadcast %cst_18 : f32 to vector<8x128xf32>
    %40 = arith.select %38, %7, %39 : vector<8x128xi1>, vector<8x128xf32>
    %41 = arith.mulf %4, %31 : vector<8x128xf32>
    %42 = arith.addf %41, %35 : vector<8x128xf32>
    %43 = arith.subf %42, %40 : vector<8x128xf32>
    %44 = arith.subf %43, %7 : vector<8x128xf32>
    %cst_19 = arith.constant 0.000000e+00 : f32
    %45 = vector.broadcast %cst_19 : f32 to vector<8x128xf32>
    %46 = arith.cmpf ogt, %44, %45 : vector<8x128xf32>
    %47 = arith.extui %46 : vector<8x128xi1> to vector<8x128xi32>
    %48 = arith.sitofp %47 : vector<8x128xi32> to vector<8x128xf32>
    %49 = arith.truncf %48 : vector<8x128xf32> to vector<8x128xbf16>
    %cst_20 = arith.constant dense<0.000000e+00> : vector<8x128xf32>
    %50 = tpu.matmul %49, %22, %cst_20 {dimension_numbers = #tpu.dot_dimension_numbers<[1], [0], [0], [1], [0, 0, 1, 1], [], []>} : vector<8x128xbf16>, vector<128x128xbf16>, vector<8x128xf32> -> vector<8x128xf32>
    %51 = arith.addf %50, %10 : vector<8x128xf32>
    %52 = arith.subf %32, %16 : vector<8x128xf32>
    %cst_21 = arith.constant 0.000000e+00 : f32
    %53 = vector.broadcast %cst_21 : f32 to vector<8x128xf32>
    %54 = arith.cmpf ogt, %52, %53 : vector<8x128xf32>
    %cst_22 = arith.constant 0.000000e+00 : f32
    %55 = vector.broadcast %cst_22 : f32 to vector<8x128xf32>
    %56 = arith.select %54, %16, %55 : vector<8x128xi1>, vector<8x128xf32>
    %57 = arith.mulf %13, %32 : vector<8x128xf32>
    %58 = arith.addf %57, %51 : vector<8x128xf32>
    %59 = arith.subf %58, %56 : vector<8x128xf32>
    %60 = arith.subf %59, %16 : vector<8x128xf32>
    %cst_23 = arith.constant 0.000000e+00 : f32
    %61 = vector.broadcast %cst_23 : f32 to vector<8x128xf32>
    %62 = arith.cmpf ogt, %60, %61 : vector<8x128xf32>
    %63 = arith.extui %62 : vector<8x128xi1> to vector<8x128xi32>
    %64 = arith.sitofp %63 : vector<8x128xi32> to vector<8x128xf32>
    %65 = arith.mulf %64, %19 : vector<8x128xf32>
    %cst_24 = arith.constant dense<0.000000e+00> : vector<8xf32>
    %66 = vector.multi_reduction <add>, %65, %cst_24 [1] : vector<8x128xf32> to vector<8xf32>
    %67 = vector.shape_cast %66 : vector<8xf32> to vector<8x1xf32>
    %68 = vector.broadcast %20 : f32 to vector<8x1xf32>
    %69 = arith.addf %67, %68 : vector<8x1xf32>
    %70 = vector.broadcast %21 : f32 to vector<8x1xf32>
    %71 = arith.mulf %70, %33 : vector<8x1xf32>
    %72 = arith.addf %71, %69 : vector<8x1xf32>
    %c0_25 = arith.constant 0 : index
    %c0_26 = arith.constant 0 : index
    %c0_27 = arith.constant 0 : index
    %73 = vector.load %arg4[%c0_25, %c0_26, %c0_27] : memref<8x8x1xf32, #tpu.memory_space<vmem>>, vector<1x8x1xf32>
    %74 = vector.shape_cast %73 : vector<1x8x1xf32> to vector<8x1xf32>
    %75 = vector.shape_cast %72 : vector<8x1xf32> to vector<1x8x1xf32>
    tpu.vector_store %arg4[%c0_25, %c0_26, %c0_27], %75 {strides = array<i32>} : memref<8x8x1xf32, #tpu.memory_space<vmem>>, vector<1x8x1xf32>,
    %76 = vector.extract_strided_slice %30 {offsets = [1, 0, 0], sizes = [1, 8, 128], strides = [1, 1, 1]} : vector<8x8x128xf32> to vector<1x8x128xf32>
    %77 = vector.shape_cast %76 : vector<1x8x128xf32> to vector<8x128xf32>
    %78 = arith.subf %43, %7 : vector<8x128xf32>
    %cst_28 = arith.constant 0.000000e+00 : f32
    %79 = vector.broadcast %cst_28 : f32 to vector<8x128xf32>
    %80 = arith.cmpf ogt, %78, %79 : vector<8x128xf32>
    %cst_29 = arith.constant 0.000000e+00 : f32
    %81 = vector.broadcast %cst_29 : f32 to vector<8x128xf32>
    %82 = arith.select %80, %7, %81 : vector<8x128xi1>, vector<8x128xf32>
    %83 = arith.mulf %4, %43 : vector<8x128xf32>
    %84 = arith.addf %83, %77 : vector<8x128xf32>
    %85 = arith.subf %84, %82 : vector<8x128xf32>
    %86 = arith.subf %85, %7 : vector<8x128xf32>
    %cst_30 = arith.constant 0.000000e+00 : f32
    %87 = vector.broadcast %cst_30 : f32 to vector<8x128xf32>
    %88 = arith.cmpf ogt, %86, %87 : vector<8x128xf32>
    %89 = arith.extui %88 : vector<8x128xi1> to vector<8x128xi32>
    %90 = arith.sitofp %89 : vector<8x128xi32> to vector<8x128xf32>
    %91 = arith.truncf %90 : vector<8x128xf32> to vector<8x128xbf16>
    %cst_31 = arith.constant dense<0.000000e+00> : vector<8x128xf32>
    %92 = tpu.matmul %91, %22, %cst_31 {dimension_numbers = #tpu.dot_dimension_numbers<[1], [0], [0], [1], [0, 0, 1, 1], [], []>} : vector<8x128xbf16>, vector<128x128xbf16>, vector<8x128xf32> -> vector<8x128xf32>
    %93 = arith.addf %92, %10 : vector<8x128xf32>
    %94 = arith.subf %59, %16 : vector<8x128xf32>
    %cst_32 = arith.constant 0.000000e+00 : f32
    %95 = vector.broadcast %cst_32 : f32 to vector<8x128xf32>
    %96 = arith.cmpf ogt, %94, %95 : vector<8x128xf32>
    %cst_33 = arith.constant 0.000000e+00 : f32
    %97 = vector.broadcast %cst_33 : f32 to vector<8x128xf32>
    %98 = arith.select %96, %16, %97 : vector<8x128xi1>, vector<8x128xf32>
    %99 = arith.mulf %13, %59 : vector<8x128xf32>
    %100 = arith.addf %99, %93 : vector<8x128xf32>
    %101 = arith.subf %100, %98 : vector<8x128xf32>
    %102 = arith.subf %101, %16 : vector<8x128xf32>
    %cst_34 = arith.constant 0.000000e+00 : f32
    %103 = vector.broadcast %cst_34 : f32 to vector<8x128xf32>
    %104 = arith.cmpf ogt, %102, %103 : vector<8x128xf32>
    %105 = arith.extui %104 : vector<8x128xi1> to vector<8x128xi32>
    %106 = arith.sitofp %105 : vector<8x128xi32> to vector<8x128xf32>
    %107 = arith.mulf %106, %19 : vector<8x128xf32>
    %cst_35 = arith.constant dense<0.000000e+00> : vector<8xf32>
    %108 = vector.multi_reduction <add>, %107, %cst_35 [1] : vector<8x128xf32> to vector<8xf32>
    %109 = vector.shape_cast %108 : vector<8xf32> to vector<8x1xf32>
    %110 = vector.broadcast %20 : f32 to vector<8x1xf32>
    %111 = arith.addf %109, %110 : vector<8x1xf32>
    %112 = vector.broadcast %21 : f32 to vector<8x1xf32>
    %113 = arith.mulf %112, %72 : vector<8x1xf32>
    %114 = arith.addf %113, %111 : vector<8x1xf32>
    %c1_36 = arith.constant 1 : index
    %c0_37 = arith.constant 0 : index
    %c0_38 = arith.constant 0 : index
    %115 = vector.load %arg4[%c1_36, %c0_37, %c0_38] : memref<8x8x1xf32, #tpu.memory_space<vmem>>, vector<1x8x1xf32>
    %116 = vector.shape_cast %115 : vector<1x8x1xf32> to vector<8x1xf32>
    %117 = vector.shape_cast %114 : vector<8x1xf32> to vector<1x8x1xf32>
    tpu.vector_store %arg4[%c1_36, %c0_37, %c0_38], %117 {strides = array<i32>} : memref<8x8x1xf32, #tpu.memory_space<vmem>>, vector<1x8x1xf32>,
    %118 = vector.extract_strided_slice %30 {offsets = [2, 0, 0], sizes = [1, 8, 128], strides = [1, 1, 1]} : vector<8x8x128xf32> to vector<1x8x128xf32>
    %119 = vector.shape_cast %118 : vector<1x8x128xf32> to vector<8x128xf32>
    %120 = arith.subf %85, %7 : vector<8x128xf32>
    %cst_39 = arith.constant 0.000000e+00 : f32
    %121 = vector.broadcast %cst_39 : f32 to vector<8x128xf32>
    %122 = arith.cmpf ogt, %120, %121 : vector<8x128xf32>
    %cst_40 = arith.constant 0.000000e+00 : f32
    %123 = vector.broadcast %cst_40 : f32 to vector<8x128xf32>
    %124 = arith.select %122, %7, %123 : vector<8x128xi1>, vector<8x128xf32>
    %125 = arith.mulf %4, %85 : vector<8x128xf32>
    %126 = arith.addf %125, %119 : vector<8x128xf32>
    %127 = arith.subf %126, %124 : vector<8x128xf32>
    %128 = arith.subf %127, %7 : vector<8x128xf32>
    %cst_41 = arith.constant 0.000000e+00 : f32
    %129 = vector.broadcast %cst_41 : f32 to vector<8x128xf32>
    %130 = arith.cmpf ogt, %128, %129 : vector<8x128xf32>
    %131 = arith.extui %130 : vector<8x128xi1> to vector<8x128xi32>
    %132 = arith.sitofp %131 : vector<8x128xi32> to vector<8x128xf32>
    %133 = arith.truncf %132 : vector<8x128xf32> to vector<8x128xbf16>
    %cst_42 = arith.constant dense<0.000000e+00> : vector<8x128xf32>
    %134 = tpu.matmul %133, %22, %cst_42 {dimension_numbers = #tpu.dot_dimension_numbers<[1], [0], [0], [1], [0, 0, 1, 1], [], []>} : vector<8x128xbf16>, vector<128x128xbf16>, vector<8x128xf32> -> vector<8x128xf32>
    %135 = arith.addf %134, %10 : vector<8x128xf32>
    %136 = arith.subf %101, %16 : vector<8x128xf32>
    %cst_43 = arith.constant 0.000000e+00 : f32
    %137 = vector.broadcast %cst_43 : f32 to vector<8x128xf32>
    %138 = arith.cmpf ogt, %136, %137 : vector<8x128xf32>
    %cst_44 = arith.constant 0.000000e+00 : f32
    %139 = vector.broadcast %cst_44 : f32 to vector<8x128xf32>
    %140 = arith.select %138, %16, %139 : vector<8x128xi1>, vector<8x128xf32>
    %141 = arith.mulf %13, %101 : vector<8x128xf32>
    %142 = arith.addf %141, %135 : vector<8x128xf32>
    %143 = arith.subf %142, %140 : vector<8x128xf32>
    %144 = arith.subf %143, %16 : vector<8x128xf32>
    %cst_45 = arith.constant 0.000000e+00 : f32
    %145 = vector.broadcast %cst_45 : f32 to vector<8x128xf32>
    %146 = arith.cmpf ogt, %144, %145 : vector<8x128xf32>
    %147 = arith.extui %146 : vector<8x128xi1> to vector<8x128xi32>
    %148 = arith.sitofp %147 : vector<8x128xi32> to vector<8x128xf32>
    %149 = arith.mulf %148, %19 : vector<8x128xf32>
    %cst_46 = arith.constant dense<0.000000e+00> : vector<8xf32>
    %150 = vector.multi_reduction <add>, %149, %cst_46 [1] : vector<8x128xf32> to vector<8xf32>
    %151 = vector.shape_cast %150 : vector<8xf32> to vector<8x1xf32>
    %152 = vector.broadcast %20 : f32 to vector<8x1xf32>
    %153 = arith.addf %151, %152 : vector<8x1xf32>
    %154 = vector.broadcast %21 : f32 to vector<8x1xf32>
    %155 = arith.mulf %154, %114 : vector<8x1xf32>
    %156 = arith.addf %155, %153 : vector<8x1xf32>
    %c2_47 = arith.constant 2 : index
    %c0_48 = arith.constant 0 : index
    %c0_49 = arith.constant 0 : index
    %157 = vector.load %arg4[%c2_47, %c0_48, %c0_49] : memref<8x8x1xf32, #tpu.memory_space<vmem>>, vector<1x8x1xf32>
    %158 = vector.shape_cast %157 : vector<1x8x1xf32> to vector<8x1xf32>
    %159 = vector.shape_cast %156 : vector<8x1xf32> to vector<1x8x1xf32>
    tpu.vector_store %arg4[%c2_47, %c0_48, %c0_49], %159 {strides = array<i32>} : memref<8x8x1xf32, #tpu.memory_space<vmem>>, vector<1x8x1xf32>,
    %160 = vector.extract_strided_slice %30 {offsets = [3, 0, 0], sizes = [1, 8, 128], strides = [1, 1, 1]} : vector<8x8x128xf32> to vector<1x8x128xf32>
    %161 = vector.shape_cast %160 : vector<1x8x128xf32> to vector<8x128xf32>
    %162 = arith.subf %127, %7 : vector<8x128xf32>
    %cst_50 = arith.constant 0.000000e+00 : f32
    %163 = vector.broadcast %cst_50 : f32 to vector<8x128xf32>
    %164 = arith.cmpf ogt, %162, %163 : vector<8x128xf32>
    %cst_51 = arith.constant 0.000000e+00 : f32
    %165 = vector.broadcast %cst_51 : f32 to vector<8x128xf32>
    %166 = arith.select %164, %7, %165 : vector<8x128xi1>, vector<8x128xf32>
    %167 = arith.mulf %4, %127 : vector<8x128xf32>
    %168 = arith.addf %167, %161 : vector<8x128xf32>
    %169 = arith.subf %168, %166 : vector<8x128xf32>
    %170 = arith.subf %169, %7 : vector<8x128xf32>
    %cst_52 = arith.constant 0.000000e+00 : f32
    %171 = vector.broadcast %cst_52 : f32 to vector<8x128xf32>
    %172 = arith.cmpf ogt, %170, %171 : vector<8x128xf32>
    %173 = arith.extui %172 : vector<8x128xi1> to vector<8x128xi32>
    %174 = arith.sitofp %173 : vector<8x128xi32> to vector<8x128xf32>
    %175 = arith.truncf %174 : vector<8x128xf32> to vector<8x128xbf16>
    %cst_53 = arith.constant dense<0.000000e+00> : vector<8x128xf32>
    %176 = tpu.matmul %175, %22, %cst_53 {dimension_numbers = #tpu.dot_dimension_numbers<[1], [0], [0], [1], [0, 0, 1, 1], [], []>} : vector<8x128xbf16>, vector<128x128xbf16>, vector<8x128xf32> -> vector<8x128xf32>
    %177 = arith.addf %176, %10 : vector<8x128xf32>
    %178 = arith.subf %143, %16 : vector<8x128xf32>
    %cst_54 = arith.constant 0.000000e+00 : f32
    %179 = vector.broadcast %cst_54 : f32 to vector<8x128xf32>
    %180 = arith.cmpf ogt, %178, %179 : vector<8x128xf32>
    %cst_55 = arith.constant 0.000000e+00 : f32
    %181 = vector.broadcast %cst_55 : f32 to vector<8x128xf32>
    %182 = arith.select %180, %16, %181 : vector<8x128xi1>, vector<8x128xf32>
    %183 = arith.mulf %13, %143 : vector<8x128xf32>
    %184 = arith.addf %183, %177 : vector<8x128xf32>
    %185 = arith.subf %184, %182 : vector<8x128xf32>
    %186 = arith.subf %185, %16 : vector<8x128xf32>
    %cst_56 = arith.constant 0.000000e+00 : f32
    %187 = vector.broadcast %cst_56 : f32 to vector<8x128xf32>
    %188 = arith.cmpf ogt, %186, %187 : vector<8x128xf32>
    %189 = arith.extui %188 : vector<8x128xi1> to vector<8x128xi32>
    %190 = arith.sitofp %189 : vector<8x128xi32> to vector<8x128xf32>
    %191 = arith.mulf %190, %19 : vector<8x128xf32>
    %cst_57 = arith.constant dense<0.000000e+00> : vector<8xf32>
    %192 = vector.multi_reduction <add>, %191, %cst_57 [1] : vector<8x128xf32> to vector<8xf32>
    %193 = vector.shape_cast %192 : vector<8xf32> to vector<8x1xf32>
    %194 = vector.broadcast %20 : f32 to vector<8x1xf32>
    %195 = arith.addf %193, %194 : vector<8x1xf32>
    %196 = vector.broadcast %21 : f32 to vector<8x1xf32>
    %197 = arith.mulf %196, %156 : vector<8x1xf32>
    %198 = arith.addf %197, %195 : vector<8x1xf32>
    %c3_58 = arith.constant 3 : index
    %c0_59 = arith.constant 0 : index
    %c0_60 = arith.constant 0 : index
    %199 = vector.load %arg4[%c3_58, %c0_59, %c0_60] : memref<8x8x1xf32, #tpu.memory_space<vmem>>, vector<1x8x1xf32>
    %200 = vector.shape_cast %199 : vector<1x8x1xf32> to vector<8x1xf32>
    %201 = vector.shape_cast %198 : vector<8x1xf32> to vector<1x8x1xf32>
    tpu.vector_store %arg4[%c3_58, %c0_59, %c0_60], %201 {strides = array<i32>} : memref<8x8x1xf32, #tpu.memory_space<vmem>>, vector<1x8x1xf32>,
    %202 = vector.extract_strided_slice %30 {offsets = [4, 0, 0], sizes = [1, 8, 128], strides = [1, 1, 1]} : vector<8x8x128xf32> to vector<1x8x128xf32>
    %203 = vector.shape_cast %202 : vector<1x8x128xf32> to vector<8x128xf32>
    %204 = arith.subf %169, %7 : vector<8x128xf32>
    %cst_61 = arith.constant 0.000000e+00 : f32
    %205 = vector.broadcast %cst_61 : f32 to vector<8x128xf32>
    %206 = arith.cmpf ogt, %204, %205 : vector<8x128xf32>
    %cst_62 = arith.constant 0.000000e+00 : f32
    %207 = vector.broadcast %cst_62 : f32 to vector<8x128xf32>
    %208 = arith.select %206, %7, %207 : vector<8x128xi1>, vector<8x128xf32>
    %209 = arith.mulf %4, %169 : vector<8x128xf32>
    %210 = arith.addf %209, %203 : vector<8x128xf32>
    %211 = arith.subf %210, %208 : vector<8x128xf32>
    %212 = arith.subf %211, %7 : vector<8x128xf32>
    %cst_63 = arith.constant 0.000000e+00 : f32
    %213 = vector.broadcast %cst_63 : f32 to vector<8x128xf32>
    %214 = arith.cmpf ogt, %212, %213 : vector<8x128xf32>
    %215 = arith.extui %214 : vector<8x128xi1> to vector<8x128xi32>
    %216 = arith.sitofp %215 : vector<8x128xi32> to vector<8x128xf32>
    %217 = arith.truncf %216 : vector<8x128xf32> to vector<8x128xbf16>
    %cst_64 = arith.constant dense<0.000000e+00> : vector<8x128xf32>
    %218 = tpu.matmul %217, %22, %cst_64 {dimension_numbers = #tpu.dot_dimension_numbers<[1], [0], [0], [1], [0, 0, 1, 1], [], []>} : vector<8x128xbf16>, vector<128x128xbf16>, vector<8x128xf32> -> vector<8x128xf32>
    %219 = arith.addf %218, %10 : vector<8x128xf32>
    %220 = arith.subf %185, %16 : vector<8x128xf32>
    %cst_65 = arith.constant 0.000000e+00 : f32
    %221 = vector.broadcast %cst_65 : f32 to vector<8x128xf32>
    %222 = arith.cmpf ogt, %220, %221 : vector<8x128xf32>
    %cst_66 = arith.constant 0.000000e+00 : f32
    %223 = vector.broadcast %cst_66 : f32 to vector<8x128xf32>
    %224 = arith.select %222, %16, %223 : vector<8x128xi1>, vector<8x128xf32>
    %225 = arith.mulf %13, %185 : vector<8x128xf32>
    %226 = arith.addf %225, %219 : vector<8x128xf32>
    %227 = arith.subf %226, %224 : vector<8x128xf32>
    %228 = arith.subf %227, %16 : vector<8x128xf32>
    %cst_67 = arith.constant 0.000000e+00 : f32
    %229 = vector.broadcast %cst_67 : f32 to vector<8x128xf32>
    %230 = arith.cmpf ogt, %228, %229 : vector<8x128xf32>
    %231 = arith.extui %230 : vector<8x128xi1> to vector<8x128xi32>
    %232 = arith.sitofp %231 : vector<8x128xi32> to vector<8x128xf32>
    %233 = arith.mulf %232, %19 : vector<8x128xf32>
    %cst_68 = arith.constant dense<0.000000e+00> : vector<8xf32>
    %234 = vector.multi_reduction <add>, %233, %cst_68 [1] : vector<8x128xf32> to vector<8xf32>
    %235 = vector.shape_cast %234 : vector<8xf32> to vector<8x1xf32>
    %236 = vector.broadcast %20 : f32 to vector<8x1xf32>
    %237 = arith.addf %235, %236 : vector<8x1xf32>
    %238 = vector.broadcast %21 : f32 to vector<8x1xf32>
    %239 = arith.mulf %238, %198 : vector<8x1xf32>
    %240 = arith.addf %239, %237 : vector<8x1xf32>
    %c4_69 = arith.constant 4 : index
    %c0_70 = arith.constant 0 : index
    %c0_71 = arith.constant 0 : index
    %241 = vector.load %arg4[%c4_69, %c0_70, %c0_71] : memref<8x8x1xf32, #tpu.memory_space<vmem>>, vector<1x8x1xf32>
    %242 = vector.shape_cast %241 : vector<1x8x1xf32> to vector<8x1xf32>
    %243 = vector.shape_cast %240 : vector<8x1xf32> to vector<1x8x1xf32>
    tpu.vector_store %arg4[%c4_69, %c0_70, %c0_71], %243 {strides = array<i32>} : memref<8x8x1xf32, #tpu.memory_space<vmem>>, vector<1x8x1xf32>,
    %244 = vector.extract_strided_slice %30 {offsets = [5, 0, 0], sizes = [1, 8, 128], strides = [1, 1, 1]} : vector<8x8x128xf32> to vector<1x8x128xf32>
    %245 = vector.shape_cast %244 : vector<1x8x128xf32> to vector<8x128xf32>
    %246 = arith.subf %211, %7 : vector<8x128xf32>
    %cst_72 = arith.constant 0.000000e+00 : f32
    %247 = vector.broadcast %cst_72 : f32 to vector<8x128xf32>
    %248 = arith.cmpf ogt, %246, %247 : vector<8x128xf32>
    %cst_73 = arith.constant 0.000000e+00 : f32
    %249 = vector.broadcast %cst_73 : f32 to vector<8x128xf32>
    %250 = arith.select %248, %7, %249 : vector<8x128xi1>, vector<8x128xf32>
    %251 = arith.mulf %4, %211 : vector<8x128xf32>
    %252 = arith.addf %251, %245 : vector<8x128xf32>
    %253 = arith.subf %252, %250 : vector<8x128xf32>
    %254 = arith.subf %253, %7 : vector<8x128xf32>
    %cst_74 = arith.constant 0.000000e+00 : f32
    %255 = vector.broadcast %cst_74 : f32 to vector<8x128xf32>
    %256 = arith.cmpf ogt, %254, %255 : vector<8x128xf32>
    %257 = arith.extui %256 : vector<8x128xi1> to vector<8x128xi32>
    %258 = arith.sitofp %257 : vector<8x128xi32> to vector<8x128xf32>
    %259 = arith.truncf %258 : vector<8x128xf32> to vector<8x128xbf16>
    %cst_75 = arith.constant dense<0.000000e+00> : vector<8x128xf32>
    %260 = tpu.matmul %259, %22, %cst_75 {dimension_numbers = #tpu.dot_dimension_numbers<[1], [0], [0], [1], [0, 0, 1, 1], [], []>} : vector<8x128xbf16>, vector<128x128xbf16>, vector<8x128xf32> -> vector<8x128xf32>
    %261 = arith.addf %260, %10 : vector<8x128xf32>
    %262 = arith.subf %227, %16 : vector<8x128xf32>
    %cst_76 = arith.constant 0.000000e+00 : f32
    %263 = vector.broadcast %cst_76 : f32 to vector<8x128xf32>
    %264 = arith.cmpf ogt, %262, %263 : vector<8x128xf32>
    %cst_77 = arith.constant 0.000000e+00 : f32
    %265 = vector.broadcast %cst_77 : f32 to vector<8x128xf32>
    %266 = arith.select %264, %16, %265 : vector<8x128xi1>, vector<8x128xf32>
    %267 = arith.mulf %13, %227 : vector<8x128xf32>
    %268 = arith.addf %267, %261 : vector<8x128xf32>
    %269 = arith.subf %268, %266 : vector<8x128xf32>
    %270 = arith.subf %269, %16 : vector<8x128xf32>
    %cst_78 = arith.constant 0.000000e+00 : f32
    %271 = vector.broadcast %cst_78 : f32 to vector<8x128xf32>
    %272 = arith.cmpf ogt, %270, %271 : vector<8x128xf32>
    %273 = arith.extui %272 : vector<8x128xi1> to vector<8x128xi32>
    %274 = arith.sitofp %273 : vector<8x128xi32> to vector<8x128xf32>
    %275 = arith.mulf %274, %19 : vector<8x128xf32>
    %cst_79 = arith.constant dense<0.000000e+00> : vector<8xf32>
    %276 = vector.multi_reduction <add>, %275, %cst_79 [1] : vector<8x128xf32> to vector<8xf32>
    %277 = vector.shape_cast %276 : vector<8xf32> to vector<8x1xf32>
    %278 = vector.broadcast %20 : f32 to vector<8x1xf32>
    %279 = arith.addf %277, %278 : vector<8x1xf32>
    %280 = vector.broadcast %21 : f32 to vector<8x1xf32>
    %281 = arith.mulf %280, %240 : vector<8x1xf32>
    %282 = arith.addf %281, %279 : vector<8x1xf32>
    %c5_80 = arith.constant 5 : index
    %c0_81 = arith.constant 0 : index
    %c0_82 = arith.constant 0 : index
    %283 = vector.load %arg4[%c5_80, %c0_81, %c0_82] : memref<8x8x1xf32, #tpu.memory_space<vmem>>, vector<1x8x1xf32>
    %284 = vector.shape_cast %283 : vector<1x8x1xf32> to vector<8x1xf32>
    %285 = vector.shape_cast %282 : vector<8x1xf32> to vector<1x8x1xf32>
    tpu.vector_store %arg4[%c5_80, %c0_81, %c0_82], %285 {strides = array<i32>} : memref<8x8x1xf32, #tpu.memory_space<vmem>>, vector<1x8x1xf32>,
    %286 = vector.extract_strided_slice %30 {offsets = [6, 0, 0], sizes = [1, 8, 128], strides = [1, 1, 1]} : vector<8x8x128xf32> to vector<1x8x128xf32>
    %287 = vector.shape_cast %286 : vector<1x8x128xf32> to vector<8x128xf32>
    %288 = arith.subf %253, %7 : vector<8x128xf32>
    %cst_83 = arith.constant 0.000000e+00 : f32
    %289 = vector.broadcast %cst_83 : f32 to vector<8x128xf32>
    %290 = arith.cmpf ogt, %288, %289 : vector<8x128xf32>
    %cst_84 = arith.constant 0.000000e+00 : f32
    %291 = vector.broadcast %cst_84 : f32 to vector<8x128xf32>
    %292 = arith.select %290, %7, %291 : vector<8x128xi1>, vector<8x128xf32>
    %293 = arith.mulf %4, %253 : vector<8x128xf32>
    %294 = arith.addf %293, %287 : vector<8x128xf32>
    %295 = arith.subf %294, %292 : vector<8x128xf32>
    %296 = arith.subf %295, %7 : vector<8x128xf32>
    %cst_85 = arith.constant 0.000000e+00 : f32
    %297 = vector.broadcast %cst_85 : f32 to vector<8x128xf32>
    %298 = arith.cmpf ogt, %296, %297 : vector<8x128xf32>
    %299 = arith.extui %298 : vector<8x128xi1> to vector<8x128xi32>
    %300 = arith.sitofp %299 : vector<8x128xi32> to vector<8x128xf32>
    %301 = arith.truncf %300 : vector<8x128xf32> to vector<8x128xbf16>
    %cst_86 = arith.constant dense<0.000000e+00> : vector<8x128xf32>
    %302 = tpu.matmul %301, %22, %cst_86 {dimension_numbers = #tpu.dot_dimension_numbers<[1], [0], [0], [1], [0, 0, 1, 1], [], []>} : vector<8x128xbf16>, vector<128x128xbf16>, vector<8x128xf32> -> vector<8x128xf32>
    %303 = arith.addf %302, %10 : vector<8x128xf32>
    %304 = arith.subf %269, %16 : vector<8x128xf32>
    %cst_87 = arith.constant 0.000000e+00 : f32
    %305 = vector.broadcast %cst_87 : f32 to vector<8x128xf32>
    %306 = arith.cmpf ogt, %304, %305 : vector<8x128xf32>
    %cst_88 = arith.constant 0.000000e+00 : f32
    %307 = vector.broadcast %cst_88 : f32 to vector<8x128xf32>
    %308 = arith.select %306, %16, %307 : vector<8x128xi1>, vector<8x128xf32>
    %309 = arith.mulf %13, %269 : vector<8x128xf32>
    %310 = arith.addf %309, %303 : vector<8x128xf32>
    %311 = arith.subf %310, %308 : vector<8x128xf32>
    %312 = arith.subf %311, %16 : vector<8x128xf32>
    %cst_89 = arith.constant 0.000000e+00 : f32
    %313 = vector.broadcast %cst_89 : f32 to vector<8x128xf32>
    %314 = arith.cmpf ogt, %312, %313 : vector<8x128xf32>
    %315 = arith.extui %314 : vector<8x128xi1> to vector<8x128xi32>
    %316 = arith.sitofp %315 : vector<8x128xi32> to vector<8x128xf32>
    %317 = arith.mulf %316, %19 : vector<8x128xf32>
    %cst_90 = arith.constant dense<0.000000e+00> : vector<8xf32>
    %318 = vector.multi_reduction <add>, %317, %cst_90 [1] : vector<8x128xf32> to vector<8xf32>
    %319 = vector.shape_cast %318 : vector<8xf32> to vector<8x1xf32>
    %320 = vector.broadcast %20 : f32 to vector<8x1xf32>
    %321 = arith.addf %319, %320 : vector<8x1xf32>
    %322 = vector.broadcast %21 : f32 to vector<8x1xf32>
    %323 = arith.mulf %322, %282 : vector<8x1xf32>
    %324 = arith.addf %323, %321 : vector<8x1xf32>
    %c6_91 = arith.constant 6 : index
    %c0_92 = arith.constant 0 : index
    %c0_93 = arith.constant 0 : index
    %325 = vector.load %arg4[%c6_91, %c0_92, %c0_93] : memref<8x8x1xf32, #tpu.memory_space<vmem>>, vector<1x8x1xf32>
    %326 = vector.shape_cast %325 : vector<1x8x1xf32> to vector<8x1xf32>
    %327 = vector.shape_cast %324 : vector<8x1xf32> to vector<1x8x1xf32>
    tpu.vector_store %arg4[%c6_91, %c0_92, %c0_93], %327 {strides = array<i32>} : memref<8x8x1xf32, #tpu.memory_space<vmem>>, vector<1x8x1xf32>,
    %328 = vector.extract_strided_slice %30 {offsets = [7, 0, 0], sizes = [1, 8, 128], strides = [1, 1, 1]} : vector<8x8x128xf32> to vector<1x8x128xf32>
    %329 = vector.shape_cast %328 : vector<1x8x128xf32> to vector<8x128xf32>
    %330 = arith.subf %295, %7 : vector<8x128xf32>
    %cst_94 = arith.constant 0.000000e+00 : f32
    %331 = vector.broadcast %cst_94 : f32 to vector<8x128xf32>
    %332 = arith.cmpf ogt, %330, %331 : vector<8x128xf32>
    %cst_95 = arith.constant 0.000000e+00 : f32
    %333 = vector.broadcast %cst_95 : f32 to vector<8x128xf32>
    %334 = arith.select %332, %7, %333 : vector<8x128xi1>, vector<8x128xf32>
    %335 = arith.mulf %4, %295 : vector<8x128xf32>
    %336 = arith.addf %335, %329 : vector<8x128xf32>
    %337 = arith.subf %336, %334 : vector<8x128xf32>
    %338 = arith.subf %337, %7 : vector<8x128xf32>
    %cst_96 = arith.constant 0.000000e+00 : f32
    %339 = vector.broadcast %cst_96 : f32 to vector<8x128xf32>
    %340 = arith.cmpf ogt, %338, %339 : vector<8x128xf32>
    %341 = arith.extui %340 : vector<8x128xi1> to vector<8x128xi32>
    %342 = arith.sitofp %341 : vector<8x128xi32> to vector<8x128xf32>
    %343 = arith.truncf %342 : vector<8x128xf32> to vector<8x128xbf16>
    %cst_97 = arith.constant dense<0.000000e+00> : vector<8x128xf32>
    %344 = tpu.matmul %343, %22, %cst_97 {dimension_numbers = #tpu.dot_dimension_numbers<[1], [0], [0], [1], [0, 0, 1, 1], [], []>} : vector<8x128xbf16>, vector<128x128xbf16>, vector<8x128xf32> -> vector<8x128xf32>
    %345 = arith.addf %344, %10 : vector<8x128xf32>
    %346 = arith.subf %311, %16 : vector<8x128xf32>
    %cst_98 = arith.constant 0.000000e+00 : f32
    %347 = vector.broadcast %cst_98 : f32 to vector<8x128xf32>
    %348 = arith.cmpf ogt, %346, %347 : vector<8x128xf32>
    %cst_99 = arith.constant 0.000000e+00 : f32
    %349 = vector.broadcast %cst_99 : f32 to vector<8x128xf32>
    %350 = arith.select %348, %16, %349 : vector<8x128xi1>, vector<8x128xf32>
    %351 = arith.mulf %13, %311 : vector<8x128xf32>
    %352 = arith.addf %351, %345 : vector<8x128xf32>
    %353 = arith.subf %352, %350 : vector<8x128xf32>
    %354 = arith.subf %353, %16 : vector<8x128xf32>
    %cst_100 = arith.constant 0.000000e+00 : f32
    %355 = vector.broadcast %cst_100 : f32 to vector<8x128xf32>
    %356 = arith.cmpf ogt, %354, %355 : vector<8x128xf32>
    %357 = arith.extui %356 : vector<8x128xi1> to vector<8x128xi32>
    %358 = arith.sitofp %357 : vector<8x128xi32> to vector<8x128xf32>
    %359 = arith.mulf %358, %19 : vector<8x128xf32>
    %cst_101 = arith.constant dense<0.000000e+00> : vector<8xf32>
    %360 = vector.multi_reduction <add>, %359, %cst_101 [1] : vector<8x128xf32> to vector<8xf32>
    %361 = vector.shape_cast %360 : vector<8xf32> to vector<8x1xf32>
    %362 = vector.broadcast %20 : f32 to vector<8x1xf32>
    %363 = arith.addf %361, %362 : vector<8x1xf32>
    %364 = vector.broadcast %21 : f32 to vector<8x1xf32>
    %365 = arith.mulf %364, %324 : vector<8x1xf32>
    %366 = arith.addf %365, %363 : vector<8x1xf32>
    %c7_102 = arith.constant 7 : index
    %c0_103 = arith.constant 0 : index
    %c0_104 = arith.constant 0 : index
    %367 = vector.load %arg4[%c7_102, %c0_103, %c0_104] : memref<8x8x1xf32, #tpu.memory_space<vmem>>, vector<1x8x1xf32>
    %368 = vector.shape_cast %367 : vector<1x8x1xf32> to vector<8x1xf32>
    %369 = vector.shape_cast %366 : vector<8x1xf32> to vector<1x8x1xf32>
    tpu.vector_store %arg4[%c7_102, %c0_103, %c0_104], %369 {strides = array<i32>} : memref<8x8x1xf32, #tpu.memory_space<vmem>>, vector<1x8x1xf32>,
    return
  }
}

</mosaic_0001>

<bundles_post_ra>
// kernel: tpu_custom_call.1
= control target key start
LH: loop header
LB: loop body
LE: loop exit
PB: predicated region body
PF: predicated region fallthrough
CT: control target
= control target key end

     0   :  { %9 = vsyncpa [#allocation3], 0  ;;  %s600_s18 = smov [#allocation2]   ;;  %s850_s0 = inlined_call_operand.vmem [shape: f32[8,8,1], index: 0, kind: input, shape index: {}]   ;;  %s851_s1 = inlined_call_operand.vmem [shape: f32[8,128], index: 1, kind: input, shape index: {}]   ;;  %s852_s2 = inlined_call_operand.vmem [shape: bf16[128,128], index: 2, kind: input, shape index: {}]   ;;  %s853_s3 = inlined_call_operand.vmem [shape: f32[2], index: 3, kind: input, shape index: {}]   ;;  %s854_s4 = inlined_call_operand.vmem [shape: f32[8,8,1], index: 4, kind: output, shape index: {}]  }
   0x1   :  { %s21_s17 = sshll.u32 %s853_s3, 4  ;;  %s22_s17 = int_to_ptr.vmem [resolvable:$true] %s21_s17 }
   0x2   :  { %24 = dma.vmem_to_smem %s22_s17, 16, %s600_s18, [#allocation3]  }
   0x3   :  { %598 = dma.done.wait [#allocation3], 16  }
   0x4   :  { %599 = vsyncadd [#allocation3], 4294967280 }
   0x5   :  { %29 = sfence }
   0x6   :  { %v64_v0 = vld [vmem:[%s850_s0 + $0x10] sm:$0xff]  ;;  %v62_v1 = vld [vmem:[%s850_s0] sm:$0xff]  ;;  %v601_v2 = vmov 0   ;;  %v570_v4 = vld [vmem:[%s852_s2 + $0x38] sm:$0xff]  ;;  %v602_v37 = vmov 1.0|1.0  }
   0x7   :  { %576 = vset.pattern.permute.xlu1 %v601_v2  ;;  %575 = vset.pattern.permute.xlu0 %v601_v2  ;;  %v66_v3 = vld [vmem:[%s850_s0 + $0x20] sm:$0xff]  ;;  %v569_v5 = vld [vmem:[%s852_s2 + $0x30] sm:$0xff]  ;;  %v65_v6 = vld [vmem:[%s850_s0 + $0x18] sm:$0xff]  ;;  %s44_s11 = sld [smem:[#allocation2]] }
   0x8   :  { %82 = vperm.xlu1 %576, %v64_v0   ;;  %72 = vperm.xlu0 %575, %v62_v1   ;;  %v63_v7 = vld [vmem:[%s850_s0 + $0x8] sm:$0xff]  ;;  %v567_v10 = vld [vmem:[%s852_s2 + $0x20] sm:$0xff]  ;;  %v69_v11 = vld [vmem:[%s850_s0 + $0x38] sm:$0xff] }
   0x9   :  { %577 = vset.pattern.permute.xlu2 %v601_v2  ;;  %187 = vmatpush.bf16.msra.mxu0 %v570_v4  ;;  %v568_v8 = vld [vmem:[%s852_s2 + $0x28] sm:$0xff]  ;;  %v68_v12 = vld [vmem:[%s850_s0 + $0x30] sm:$0xff]  ;;  %v566_v13 = vld [vmem:[%s852_s2 + $0x18] sm:$0xff] }
   0xa   :  { %92 = vperm.xlu2 %577, %v66_v3   ;;  %229 = vmatpush.bf16.msra.mxu1 %v570_v4  ;;  %v67_v9 = vld [vmem:[%s850_s0 + $0x28] sm:$0xff]  ;;  %v565_v14 = vld [vmem:[%s852_s2 + $0x10] sm:$0xff]  ;;  %v563_v16 = vld [vmem:[%s852_s2] sm:$0xff] }
   0xb   :  { %267 = vmatpush.bf16.msra.mxu2 %v570_v4  ;;  %305 = vmatpush.bf16.msra.mxu3 %v570_v4  ;;  %v564_v15 = vld [vmem:[%s852_s2 + $0x8] sm:$0xff]  ;;  %v683_v17 = vld [vmem:[%s851_s1 + $0x3] ss:$0 sm:$0xff]  ;;  %v688_v18 = vld [vmem:[%s851_s1] ss:$0 sm:$0xff] }
   0xc   :  { %v693_v19 = vld [vmem:[%s851_s1 + $0x2] ss:$0 sm:$0xff]  ;;  %v128_v20 = vsub.f32 0.0, %v683_v17  ;;  %v699_v21 = vld [vmem:[%s851_s1 + $0x1] ss:$0 sm:$0xff] }
   0xd   :  { %188 = vmatpush.bf16.msra.mxu0 %v569_v5  ;;  %v131_v24 = vmul.f32 0.0, %v693_v19 }
   0xe   :  { %230 = vmatpush.bf16.msra.mxu1 %v569_v5  ;;  %vm129_vm0 = vcmp.gt.f32.partialorder %v128_v20, 0.0 }
   0xf   :  { %268 = vmatpush.bf16.msra.mxu2 %v569_v5  ;;  %306 = vmatpush.bf16.msra.mxu3 %v569_v5  ;;  %v130_v26 = vsel %vm129_vm0, %v683_v17, 0.0 }
  0x10   :  { %87 = vperm.xlu1 %576, %v65_v6   ;;  %77 = vperm.xlu0 %575, %v63_v7  }
  0x11   :  { %189 = vmatpush.bf16.msra.mxu0 %v568_v8 }
  0x12   :  { %97 = vperm.xlu2 %577, %v67_v9   ;;  %231 = vmatpush.bf16.msra.mxu1 %v568_v8 }
  0x13   :  { %269 = vmatpush.bf16.msra.mxu2 %v568_v8  ;;  %307 = vmatpush.bf16.msra.mxu3 %v568_v8 }
  0x15   :  { %190 = vmatpush.bf16.msra.mxu0 %v567_v10 }
  0x16   :  { %232 = vmatpush.bf16.msra.mxu1 %v567_v10 }
  0x17   :  { %270 = vmatpush.bf16.msra.mxu2 %v567_v10  ;;  %308 = vmatpush.bf16.msra.mxu3 %v567_v10 }
  0x18   :  { %107 = vperm.xlu1 %576, %v69_v11   ;;  %102 = vperm.xlu0 %575, %v68_v12  }
  0x19   :  { %191 = vmatpush.bf16.msra.mxu0 %v566_v13 }
  0x1a   :  { %233 = vmatpush.bf16.msra.mxu1 %v566_v13 }
  0x1b   :  { %271 = vmatpush.bf16.msra.mxu2 %v566_v13  ;;  %309 = vmatpush.bf16.msra.mxu3 %v566_v13 }
  0x1d   :  { %192 = vmatpush.bf16.msra.mxu0 %v565_v14 }
  0x1e   :  { %234 = vmatpush.bf16.msra.mxu1 %v565_v14 }
  0x1f   :  { %272 = vmatpush.bf16.msra.mxu2 %v565_v14  ;;  %310 = vmatpush.bf16.msra.mxu3 %v565_v14 }
  0x21   :  { %193 = vmatpush.bf16.msra.mxu0 %v564_v15 }
  0x22   :  { %235 = vmatpush.bf16.msra.mxu1 %v564_v15 }
  0x23   :  { %273 = vmatpush.bf16.msra.mxu2 %v564_v15  ;;  %311 = vmatpush.bf16.msra.mxu3 %v564_v15 }
  0x25   :  { %194 = vmatpush.bf16.msra.mxu0 %v563_v16 }
  0x26   :  { %236 = vmatpush.bf16.msra.mxu1 %v563_v16 }
  0x27   :  { %274 = vmatpush.bf16.msra.mxu2 %v563_v16  ;;  %312 = vmatpush.bf16.msra.mxu3 %v563_v16 }
  0x29   :  { %343 = vmatpush.bf16.msrb.mxu0 %v570_v4 }
  0x2a   :  { %381 = vmatpush.bf16.msrb.mxu1 %v570_v4 }
  0x2b   :  { %419 = vmatpush.bf16.msrb.mxu2 %v570_v4  ;;  %457 = vmatpush.bf16.msrb.mxu3 %v570_v4 }
  0x2d   :  { %344 = vmatpush.bf16.msrb.mxu0 %v569_v5 }
  0x2e   :  { %382 = vmatpush.bf16.msrb.mxu1 %v569_v5 }
  0x2f   :  { %420 = vmatpush.bf16.msrb.mxu2 %v569_v5  ;;  %458 = vmatpush.bf16.msrb.mxu3 %v569_v5 }
  0x31   :  { %345 = vmatpush.bf16.msrb.mxu0 %v568_v8 }
  0x32   :  { %383 = vmatpush.bf16.msrb.mxu1 %v568_v8 }
  0x33   :  { %421 = vmatpush.bf16.msrb.mxu2 %v568_v8  ;;  %459 = vmatpush.bf16.msrb.mxu3 %v568_v8 }
  0x35   :  { %346 = vmatpush.bf16.msrb.mxu0 %v567_v10 }
  0x36   :  { %384 = vmatpush.bf16.msrb.mxu1 %v567_v10 }
  0x37   :  { %422 = vmatpush.bf16.msrb.mxu2 %v567_v10  ;;  %460 = vmatpush.bf16.msrb.mxu3 %v567_v10 }
  0x39   :  { %347 = vmatpush.bf16.msrb.mxu0 %v566_v13 }
  0x3a   :  { %385 = vmatpush.bf16.msrb.mxu1 %v566_v13 }
  0x3b   :  { %423 = vmatpush.bf16.msrb.mxu2 %v566_v13  ;;  %461 = vmatpush.bf16.msrb.mxu3 %v566_v13 }
  0x3d   :  { %348 = vmatpush.bf16.msrb.mxu0 %v565_v14 }
  0x3e   :  { %386 = vmatpush.bf16.msrb.mxu1 %v565_v14 }
  0x3f   :  { %424 = vmatpush.bf16.msrb.mxu2 %v565_v14  ;;  %462 = vmatpush.bf16.msrb.mxu3 %v565_v14 }
  0x41   :  { %349 = vmatpush.bf16.msrb.mxu0 %v564_v15 }
  0x42   :  { %387 = vmatpush.bf16.msrb.mxu1 %v564_v15 }
  0x43   :  { %425 = vmatpush.bf16.msrb.mxu2 %v564_v15  ;;  %463 = vmatpush.bf16.msrb.mxu3 %v564_v15 }
  0x45   :  { %350 = vmatpush.bf16.msrb.mxu0 %v563_v16 }
  0x46   :  { %388 = vmatpush.bf16.msrb.mxu1 %v563_v16 }
  0x47   :  { %426 = vmatpush.bf16.msrb.mxu2 %v563_v16  ;;  %464 = vmatpush.bf16.msrb.mxu3 %v563_v16 }
  0x64   :  { %v93_v44 = vpop.permute.xlu2 %92 }
  0x65   :  { %v115_v52 = vmul.f32 %v688_v18, %v93_v44 }
  0x67   :  { %v124_v57 = vadd.f32 %v699_v21, %v115_v52 }
  0x6c   :  { %v98_v56 = vpop.permute.xlu2 %97 }
  0x6d   :  { %v116_v60 = vmul.f32 %v688_v18, %v98_v56 }
  0x6f   :  { %v125_v1 = vadd.f32 %v699_v21, %v116_v60 }
  0x7a   :  { %v73_v22 = vpop.permute.xlu0 %72  ;;  %v83_v29 = vpop.permute.xlu1 %82 }
  0x7b   :  { %v111_v23 = vmul.f32 %v688_v18, %v73_v22  ;;  %v113_v35 = vmul.f32 %v688_v18, %v83_v29 }
  0x7d   :  { %v120_v25 = vadd.f32 %v699_v21, %v111_v23  ;;  %v122_v40 = vadd.f32 %v699_v21, %v113_v35 }
  0x7f   :  { %v132_v27 = vadd.f32 %v131_v24, %v120_v25 }
  0x81   :  { %v133_v28 = vsub.f32 %v132_v27, %v130_v26 }
  0x82   :  { %v78_v30 = vpop.permute.xlu0 %77  ;;  %v88_v43 = vpop.permute.xlu1 %87 }
  0x83   :  { %v112_v31 = vmul.f32 %v688_v18, %v78_v30  ;;  %v134_v32 = vsub.f32 %v133_v28, %v683_v17  ;;  %v221_v34 = vmul.f32 %v693_v19, %v133_v28  ;;  %v114_v45 = vmul.f32 %v688_v18, %v88_v43 }
  0x85   :  { %v121_v33 = vadd.f32 %v699_v21, %v112_v31  ;;  %vm135_vm1 = vcmp.gt.f32.partialorder %v134_v32, 0.0  ;;  %v123_v49 = vadd.f32 %v699_v21, %v114_v45 }
  0x86   :  { %vm525_vm2 = vmpackc.low %vm135_vm1, %vm135_vm1  ;;  %v220_v38 = vsel %vm135_vm1, %v683_v17, 0.0 }
  0x87   :  { %v222_v36 = vadd.f32 %v221_v34, %v121_v33  ;;  %526 = vmatmul.msk.bf16.vlgmr.msra.gmra.mxu0 %vm525_vm2, %v602_v37  ;;  %v772_v34 = vld [vmem:[%s851_s1 + $0x7] ss:$0 sm:$0xff] }
  0x89   :  { %v223_v39 = vsub.f32 %v222_v36, %v220_v38 }
  0x8a   :  { %v103_v0 = vpop.permute.xlu0 %102  ;;  %v108_v8 = vpop.permute.xlu1 %107 }
  0x8b   :  { %v259_v41 = vmul.f32 %v693_v19, %v223_v39  ;;  %v224_v42 = vsub.f32 %v223_v39, %v683_v17  ;;  %v117_v4 = vmul.f32 %v688_v18, %v103_v0  ;;  %v118_v12 = vmul.f32 %v688_v18, %v108_v8 }
  0x8c   :  { %v603_v39 = vmov 0.0  }
  0x8d   :  { %vm225_vm3 = vcmp.gt.f32.partialorder %v224_v42, 0.0  ;;  %v260_v46 = vadd.f32 %v259_v41, %v122_v40  ;;  %v126_v9 = vadd.f32 %v699_v21, %v117_v4  ;;  %v127_v16 = vadd.f32 %v699_v21, %v118_v12  ;;  %v757_v21 = vld [vmem:[%s851_s1 + $0x5] ss:$0 sm:$0xff] }
  0x8e   :  { %vm529_vm4 = vmpackc.low %vm225_vm3, %vm225_vm3  ;;  %v258_v47 = vsel %vm225_vm3, %v683_v17, 0.0  ;;  %v203_v27 = vmul.f32 0.0, %v757_v21 }
  0x8f   :  { %530 = vmatmul.msk.bf16.vlgmr.msra.gmra.mxu1 %vm529_vm4, %v602_v37  ;;  %v261_v48 = vsub.f32 %v260_v46, %v258_v47 }
  0x91   :  { %v297_v50 = vmul.f32 %v693_v19, %v261_v48  ;;  %v262_v51 = vsub.f32 %v261_v48, %v683_v17 }
  0x93   :  { %vm263_vm5 = vcmp.gt.f32.partialorder %v262_v51, 0.0  ;;  %v298_v53 = vadd.f32 %v297_v50, %v123_v49 }
  0x94   :  { %vm534_vm6 = vmpackc.low %vm263_vm5, %vm263_vm5  ;;  %v296_v54 = vsel %vm263_vm5, %v683_v17, 0.0 }
  0x95   :  { %535 = vmatmul.msk.bf16.vlgmr.msra.gmra.mxu2 %vm534_vm6, %v602_v37  ;;  %v299_v55 = vsub.f32 %v298_v53, %v296_v54 }
  0x97   :  { %v335_v58 = vmul.f32 %v693_v19, %v299_v55  ;;  %v300_v59 = vsub.f32 %v299_v55, %v683_v17 }
  0x99   :  { %v336_v61 = vadd.f32 %v335_v58, %v124_v57  ;;  %vm301_vm7 = vcmp.gt.f32.partialorder %v300_v59, 0.0 }
  0x9a   :  { %vm539_vm8 = vmpackc.low %vm301_vm7, %vm301_vm7  ;;  %v334_v62 = vsel %vm301_vm7, %v683_v17, 0.0 }
  0x9b   :  { %540 = vmatmul.msk.bf16.vlgmr.msra.gmra.mxu3 %vm539_vm8, %v602_v37  ;;  %v337_v63 = vsub.f32 %v336_v61, %v334_v62 }
  0x9d   :  { %v373_v2 = vmul.f32 %v693_v19, %v337_v63  ;;  %v338_v3 = vsub.f32 %v337_v63, %v683_v17 }
  0x9f   :  { %v374_v5 = vadd.f32 %v373_v2, %v125_v1  ;;  %vm339_vm9 = vcmp.gt.f32.partialorder %v338_v3, 0.0 }
  0xa0   :  { %vm544_vm10 = vmpackc.low %vm339_vm9, %vm339_vm9  ;;  %v372_v6 = vsel %vm339_vm9, %v683_v17, 0.0 }
  0xa1   :  { %545 = vmatmul.msk.bf16.vlgmr.msrb.gmra.mxu0 %vm544_vm10, %v602_v37  ;;  %v375_v7 = vsub.f32 %v374_v5, %v372_v6  ;;  %vm218_vm10 = vcmask 7168  }
  0xa3   :  { %v411_v10 = vmul.f32 %v693_v19, %v375_v7  ;;  %v376_v11 = vsub.f32 %v375_v7, %v683_v17 }
  0xa5   :  { %vm377_vm11 = vcmp.gt.f32.partialorder %v376_v11, 0.0  ;;  %v412_v13 = vadd.f32 %v411_v10, %v126_v9 }
  0xa6   :  { %vm549_vm12 = vmpackc.low %vm377_vm11, %vm377_vm11  ;;  %v410_v14 = vsel %vm377_vm11, %v683_v17, 0.0 }
  0xa7   :  { %550 = vmatmul.msk.bf16.vlgmr.msrb.gmra.mxu1 %vm549_vm12, %v602_v37  ;;  %v413_v15 = vsub.f32 %v412_v13, %v410_v14 }
  0xa9   :  { %v449_v20 = vmul.f32 %v693_v19, %v413_v15  ;;  %v414_v22 = vsub.f32 %v413_v15, %v683_v17  ;;  %v752_v19 = vld [vmem:[%s851_s1 + $0x6] ss:$0 sm:$0xff] }
  0xaa   :  { %v200_v26 = vsub.f32 0.0, %v752_v19 }
  0xab   :  { %vm415_vm13 = vcmp.gt.f32.partialorder %v414_v22, 0.0  ;;  %v450_v23 = vadd.f32 %v449_v20, %v127_v16 }
  0xac   :  { %vm554_vm14 = vmpackc.low %vm415_vm13, %vm415_vm13  ;;  %v448_v24 = vsel %vm415_vm13, %v683_v17, 0.0  ;;  %vm201_vm1 = vcmp.gt.f32.partialorder %v200_v26, 0.0 }
  0xad   :  { %555 = vmatmul.msk.bf16.vlgmr.msrb.gmra.mxu2 %vm554_vm14, %v602_v37  ;;  %v451_v18 = vsub.f32 %v450_v23, %v448_v24  ;;  %v202_v30 = vsel %vm201_vm1, %v752_v19, 0.0 }
  0xaf   :  { %v452_v25 = vsub.f32 %v451_v18, %v683_v17  ;;  %v763_v17 = vld [vmem:[%s851_s1 + $0x4] ss:$0 sm:$0xff]  ;;  %s491_s1 = sld [smem:[#allocation2 + $0x1]] }
  0xb1   :  { %vm453_vm15 = vcmp.gt.f32.partialorder %v452_v25, 0.0 }
  0xb2   :  { %vm559_vm0 = vmpackc.low %vm453_vm15, %vm453_vm15 }
  0xb3   :  { %560 = vmatmul.msk.bf16.vlgmr.msrb.gmra.mxu3 %vm559_vm0, %v602_v37 }
 0x104   :  { %v196_v28 = vpop.f32.mrf.mxu0 }
 0x105   :  { %v197_v29 = vadd.f32 %v763_v17, %v196_v28 }
 0x107   :  { %v204_v31 = vadd.f32 %v203_v27, %v197_v29 }
 0x109   :  { %v205_v32 = vsub.f32 %v204_v31, %v202_v30 }
 0x10b   :  { %v206_v33 = vsub.f32 %v205_v32, %v752_v19  ;;  %v243_v38 = vmul.f32 %v757_v21, %v205_v32 }
 0x10c   :  { %v198_v35 = vpop.f32.mrf.mxu0  ;;  %v238_v36 = vpop.f32.mrf.mxu1 }
 0x10d   :  { %vm207_vm2 = vcmp.gt.f32.partialorder %v206_v33, 0.0  ;;  %v239_v37 = vadd.f32 %v763_v17, %v238_v36 }
 0x10e   :  { %v527_v40 = vsel %vm207_vm2, 1.0, %v603_v39  ;;  %v242_v43 = vsel %vm207_vm2, %v752_v19, 0.0 }
 0x10f   :  { %v244_v41 = vadd.f32 %v243_v38, %v239_v37  ;;  %v210_v42 = vmul.f32 %v772_v34, %v527_v40 }
 0x111   :  { %v245_v44 = vsub.f32 %v244_v41, %v242_v43  ;;  %211 = vadd.xlane.f32.xlu2 %v210_v42 }
 0x113   :  { %v246_v45 = vsub.f32 %v245_v44, %v752_v19  ;;  %v281_v51 = vmul.f32 %v757_v21, %v245_v44 }
 0x114   :  { %v240_v46 = vpop.f32.mrf.mxu1 }
 0x115   :  { %vm247_vm3 = vcmp.gt.f32.partialorder %v246_v45, 0.0 }
 0x116   :  { %v531_v47 = vsel %vm247_vm3, 1.0, %v603_v39  ;;  %v280_v53 = vsel %vm247_vm3, %v752_v19, 0.0 }
 0x117   :  { %v250_v48 = vmul.f32 %v772_v34, %v531_v47 }
 0x118   :  { %v276_v49 = vpop.f32.mrf.mxu2 }
 0x119   :  { %v277_v50 = vadd.f32 %v763_v17, %v276_v49  ;;  %251 = vadd.xlane.f32.xlu0 %v250_v48  ;;  %v215_v48 = vstv %s491_s1  ;;  %v213_v49 = vstv %s44_s11 }
 0x11b   :  { %v282_v52 = vadd.f32 %v281_v51, %v277_v50  ;;  %v216_v50 = vmul.f32 0.0, %v215_v48 }
 0x11d   :  { %v283_v54 = vsub.f32 %v282_v52, %v280_v53 }
 0x11e   :  { %v314_v55 = vpop.f32.mrf.mxu3  ;;  %v352_v56 = vpop.f32.mrf.mxu0 }
 0x11f   :  { %v284_v57 = vsub.f32 %v283_v54, %v752_v19  ;;  %v315_v58 = vadd.f32 %v763_v17, %v314_v55  ;;  %v319_v59 = vmul.f32 %v757_v21, %v283_v54  ;;  %v353_v4 = vadd.f32 %v763_v17, %v352_v56 }
 0x120   :  { %v278_v60 = vpop.f32.mrf.mxu2 }
 0x121   :  { %vm285_vm4 = vcmp.gt.f32.partialorder %v284_v57, 0.0  ;;  %v320_v61 = vadd.f32 %v319_v59, %v315_v58 }
 0x122   :  { %v318_v62 = vsel %vm285_vm4, %v752_v19, 0.0  ;;  %v536_v63 = vsel %vm285_vm4, 1.0, %v603_v39 }
 0x123   :  { %v321_v0 = vsub.f32 %v320_v61, %v318_v62  ;;  %v288_v1 = vmul.f32 %v772_v34, %v536_v63 }
 0x124   :  { %v390_v2 = vpop.f32.mrf.mxu1 }
 0x125   :  { %v322_v3 = vsub.f32 %v321_v0, %v752_v19  ;;  %v357_v5 = vmul.f32 %v757_v21, %v321_v0  ;;  %289 = vadd.xlane.f32.xlu1 %v288_v1  ;;  %v391_v14 = vadd.f32 %v763_v17, %v390_v2 }
 0x126   :  { %v316_v6 = vpop.f32.mrf.mxu3  ;;  %v354_v7 = vpop.f32.mrf.mxu0 }
 0x127   :  { %vm323_vm5 = vcmp.gt.f32.partialorder %v322_v3, 0.0  ;;  %v358_v8 = vadd.f32 %v357_v5, %v353_v4 }
 0x128   :  { %v356_v9 = vsel %vm323_vm5, %v752_v19, 0.0  ;;  %v541_v10 = vsel %vm323_vm5, 1.0, %v603_v39 }
 0x129   :  { %v359_v11 = vsub.f32 %v358_v8, %v356_v9  ;;  %v326_v12 = vmul.f32 %v772_v34, %v541_v10 }
 0x12b   :  { %v360_v13 = vsub.f32 %v359_v11, %v752_v19  ;;  %v395_v15 = vmul.f32 %v757_v21, %v359_v11  ;;  %327 = vadd.xlane.f32.xlu2 %v326_v12 }
 0x12c   :  { %v392_v16 = vpop.f32.mrf.mxu1 }
 0x12d   :  { %vm361_vm6 = vcmp.gt.f32.partialorder %v360_v13, 0.0  ;;  %v396_v20 = vadd.f32 %v395_v15, %v391_v14 }
 0x12e   :  { %v394_v22 = vsel %vm361_vm6, %v752_v19, 0.0  ;;  %v546_v23 = vsel %vm361_vm6, 1.0, %v603_v39 }
 0x12f   :  { %v397_v24 = vsub.f32 %v396_v20, %v394_v22  ;;  %v364_v28 = vmul.f32 %v772_v34, %v546_v23 }
 0x130   :  { %v428_v18 = vpop.f32.mrf.mxu2 }
 0x131   :  { %v398_v25 = vsub.f32 %v397_v24, %v752_v19  ;;  %v429_v26 = vadd.f32 %v763_v17, %v428_v18  ;;  %v433_v27 = vmul.f32 %v757_v21, %v397_v24 }
 0x133   :  { %vm399_vm7 = vcmp.gt.f32.partialorder %v398_v25, 0.0  ;;  %v434_v29 = vadd.f32 %v433_v27, %v429_v26  ;;  %365 = vadd.xlane.f32.xlu2 %v364_v28 }
 0x134   :  { %v432_v30 = vsel %vm399_vm7, %v752_v19, 0.0  ;;  %v551_v31 = vsel %vm399_vm7, 1.0, %v603_v39 }
 0x135   :  { %v435_v32 = vsub.f32 %v434_v29, %v432_v30  ;;  %v402_v33 = vmul.f32 %v772_v34, %v551_v31 }
 0x136   :  { %v466_v35 = vpop.f32.mrf.mxu3 }
 0x137   :  { %v467_v36 = vadd.f32 %v763_v17, %v466_v35  ;;  %v471_v37 = vmul.f32 %v757_v21, %v435_v32  ;;  %403 = vadd.xlane.f32.xlu0 %v402_v33  ;;  %v436_v38 = vsub.f32 %v435_v32, %v752_v19 }
 0x138   :  { %v430_v40 = vpop.f32.mrf.mxu2 }
 0x139   :  { %v472_v41 = vadd.f32 %v471_v37, %v467_v36  ;;  %vm437_vm8 = vcmp.gt.f32.partialorder %v436_v38, 0.0 }
 0x13a   :  { %v556_v42 = vsel %vm437_vm8, 1.0, %v603_v39  ;;  %v470_v43 = vsel %vm437_vm8, %v752_v19, 0.0 }
 0x13b   :  { %v440_v44 = vmul.f32 %v772_v34, %v556_v42  ;;  %v473_v45 = vsub.f32 %v472_v41, %v470_v43 }
 0x13d   :  { %441 = vadd.xlane.f32.xlu1 %v440_v44  ;;  %v474_v46 = vsub.f32 %v473_v45, %v752_v19 }
 0x13e   :  { %v468_v47 = vpop.f32.mrf.mxu3 }
 0x13f   :  { %vm475_vm9 = vcmp.gt.f32.partialorder %v474_v46, 0.0 }
 0x140   :  { %v561_v21 = vsel %vm475_vm9, 1.0, %v603_v39 }
 0x141   :  { %v478_v17 = vmul.f32 %v772_v34, %v561_v21 }
 0x143   :  { %479 = vadd.xlane.f32.xlu2 %v478_v17 }
 0x184   :  { %v212_v51 = vpop.xlane.xlu2 %211 }
 0x185   :  { %v214_v52 = vadd.f32 %v213_v49, %v212_v51 }
 0x187   :  { %v217_v53 = vadd.f32 %v216_v50, %v214_v52 }
 0x189   :  { %219 = vst.msk [vmem:[%s854_s4] sm:$0xff] %vm218_vm10, %v217_v53  ;;  %v254_v39 = vmul.f32 %v217_v53, %v215_v48 }
 0x18c   :  { %v252_v19 = vpop.xlane.xlu0 %251 }
 0x18d   :  { %v253_v54 = vadd.f32 %v252_v19, %v213_v49 }
 0x18f   :  { %v255_v55 = vadd.f32 %v254_v39, %v253_v54 }
 0x191   :  { %532 = vst.msk [vmem:[%s854_s4 + $0x8] sm:$0xff] %vm218_vm10, %v255_v55  ;;  %v292_v57 = vmul.f32 %v255_v55, %v215_v48 }
 0x198   :  { %v290_v34 = vpop.xlane.xlu1 %289 }
 0x199   :  { %v291_v56 = vadd.f32 %v290_v34, %v213_v49 }
 0x19b   :  { %v293_v58 = vadd.f32 %v292_v57, %v291_v56 }
 0x19d   :  { %537 = vst.msk [vmem:[%s854_s4 + $0x10] sm:$0xff] %vm218_vm10, %v293_v58  ;;  %v330_v60 = vmul.f32 %v293_v58, %v215_v48 }
 0x19e   :  { %v328_v59 = vpop.xlane.xlu2 %327 }
 0x19f   :  { %v329_v61 = vadd.f32 %v328_v59, %v213_v49 }
 0x1a1   :  { %v331_v62 = vadd.f32 %v330_v60, %v329_v61 }
 0x1a3   :  { %542 = vst.msk [vmem:[%s854_s4 + $0x18] sm:$0xff] %vm218_vm10, %v331_v62  ;;  %v368_v0 = vmul.f32 %v331_v62, %v215_v48 }
 0x1a6   :  { %v366_v63 = vpop.xlane.xlu2 %365 }
 0x1a7   :  { %v367_v1 = vadd.f32 %v366_v63, %v213_v49 }
 0x1a9   :  { %v369_v2 = vadd.f32 %v368_v0, %v367_v1 }
 0x1aa   :  { %v404_v3 = vpop.xlane.xlu0 %403 }
 0x1ab   :  { %547 = vst.msk [vmem:[%s854_s4 + $0x20] sm:$0xff] %vm218_vm10, %v369_v2  ;;  %v405_v4 = vadd.f32 %v404_v3, %v213_v49  ;;  %v406_v5 = vmul.f32 %v369_v2, %v215_v48 }
 0x1ad   :  { %v407_v6 = vadd.f32 %v406_v5, %v405_v4 }
 0x1af   :  { %552 = vst.msk [vmem:[%s854_s4 + $0x28] sm:$0xff] %vm218_vm10, %v407_v6  ;;  %v444_v9 = vmul.f32 %v407_v6, %v215_v48 }
 0x1b0   :  { %v442_v7 = vpop.xlane.xlu1 %441 }
 0x1b1   :  { %v443_v8 = vadd.f32 %v442_v7, %v213_v49 }
 0x1b3   :  { %v445_v10 = vadd.f32 %v444_v9, %v443_v8 }
 0x1b5   :  { %557 = vst.msk [vmem:[%s854_s4 + $0x30] sm:$0xff] %vm218_vm10, %v445_v10  ;;  %v482_v12 = vmul.f32 %v445_v10, %v215_v48 }
 0x1b6   :  { %v480_v11 = vpop.xlane.xlu2 %479 }
 0x1b7   :  { %v481_v13 = vadd.f32 %v480_v11, %v213_v49 }
 0x1b9   :  { %v483_v14 = vadd.f32 %v482_v12, %v481_v13 }
 0x1bb   :  { %562 = vst.msk [vmem:[%s854_s4 + $0x38] sm:$0xff] %vm218_vm10, %v483_v14 }
 0x1bc   :  { %490 = vsyncpa [#allocation3], 1 }

</bundles_post_ra>
